<compile_context>
chip_gen: v6e
topology: v6e:2x2x1
jax: 0.10.0
libtpu: 0.0.40
codegen_flags: <defaults>
</compile_context>

<pallas_src>
import jax
import jax.numpy as jnp
import numpy as np
from jax.experimental import pallas as pl
from jax.experimental.pallas import tpu as pltpu


def _categorical_kernel(x_ref, wt_ref, b_ref, logp_ref):
    # x_ref:    [TB, num_inputs]           native dtype (f32 or bf16)
    # wt_ref:   [num_inputs, num_outputs]  bf16, VMEM-resident (constant index_map)
    # b_ref:    [1, num_outputs]           f32, VMEM-resident
    # logp_ref: [TB, num_outputs]          out_dtype
    x = x_ref[...].astype(jnp.bfloat16)          # in-kernel cast: free VPU op here
    y = jnp.dot(x, wt_ref[...], preferred_element_type=jnp.float32) + b_ref[...]

    # Categorical(logits=y) normalization: max-stabilized log-softmax, all math in f32.
    m = jnp.max(y, axis=-1, keepdims=True)
    z = y - m
    lse = jnp.log(jnp.sum(jnp.exp(z), axis=-1, keepdims=True))
    logp_ref[...] = (z - lse).astype(logp_ref.dtype)


def categorical_net_init(weight, bias):
    """One-time parameter prep (hoisted out of the per-call hot path).

    weight: [num_outputs, num_inputs] (PyTorch nn.Linear layout).
    Returns (w_t, bias2) with w_t = weight.T in bf16 and bias2 = [1, num_outputs] f32.
    """
    w_t = jnp.asarray(weight, dtype=jnp.float32).T.astype(jnp.bfloat16)
    b2 = jnp.asarray(bias, dtype=jnp.float32).reshape(1, -1)
    return w_t, b2


def _round_up(n, m):
    return (n + m - 1) // m * m


def _pick_tile_b(B, tile_b):
    if B > tile_b:
        return tile_b
    # Whole batch fits one tile; split in two for batches >= 256 so the "parallel"
    # batch axis exposes >= 2 grid steps to v7x's two TensorCores (8-row aligned).
    if B >= 256 and B % 16 == 0:
        return B // 2
    return B


def categorical_net_forward(x, w_t, bias2, *, tile_b=2048, out_dtype=jnp.float32):
    """x: [B, num_inputs] (any float dtype); w_t: [num_inputs, num_outputs] bf16;
    bias2: [1, num_outputs] f32.  Returns normalized log-probs [B, num_outputs]."""
    B, num_inputs = x.shape
    num_outputs = w_t.shape[1]

    TB = _pick_tile_b(B, tile_b)
    grid = (pl.cdiv(B, TB),)

    # Scoped-VMEM sizing: double-buffered x/out blocks (last dim lane-padded to 128)
    # plus the resident (single-buffered) params.  Only raise the limit when the
    # footprint approaches v5e's 16 MiB default scoped-VMEM.
    in_item = np.dtype(x.dtype).itemsize
    out_item = np.dtype(out_dtype).itemsize
    blk_bytes = (TB * _round_up(num_inputs, 128) * in_item
                 + TB * _round_up(num_outputs, 128) * out_item)
    need = 2 * blk_bytes + num_inputs * _round_up(num_outputs, 128) * 2 + 4 * 128
    cp_kwargs = dict(dimension_semantics=("parallel",))
    if need > (12 << 20):
        cp_kwargs["vmem_limit_bytes"] = int(min(2 * need, 56 << 20))

    log_probs = pl.pallas_call(
        _categorical_kernel,
        out_shape=jax.ShapeDtypeStruct((B, num_outputs), out_dtype),
        grid_spec=pltpu.PrefetchScalarGridSpec(
            num_scalar_prefetch=0,
            grid=grid,
            in_specs=[
                pl.BlockSpec((TB, num_inputs), lambda i: (i, 0)),
                # Constant index_map -> VMEM-resident; single buffer is enough.
                pl.BlockSpec((num_inputs, num_outputs), lambda i: (0, 0),
                             pipeline_mode=pl.Buffered(1)),
                pl.BlockSpec((1, num_outputs), lambda i: (0, 0),
                             pipeline_mode=pl.Buffered(1)),
            ],
            out_specs=pl.BlockSpec((TB, num_outputs), lambda i: (i, 0)),
        ),
        compiler_params=pltpu.CompilerParams(**cp_kwargs),
    )(x, w_t, bias2)
    return log_probs


class CustomFixedCategoricalJax:
    """Stand-in for CustomFixedCategorical, built from the kernel's normalized log-probs."""

    def __init__(self, log_probs):
        # torch.distributions.Categorical(logits=...) stores normalized logits.
        self.logits = log_probs

    @property
    def probs(self):
        return jnp.exp(self.logits)  # derived lazily; not written back from the kernel

    def mode(self):
        return jnp.argmax(self.logits, axis=-1, keepdims=True)

    def log_probs(self, actions):
        # actions: [B, 1] int -> [B, 1] float
        a = actions.reshape(actions.shape[0])
        lp = jnp.take_along_axis(self.logits, a[:, None], axis=-1)
        return lp.reshape(actions.shape[0], -1).sum(-1)[:, None]

    def sample(self, key):
        # Gumbel-max sampling from normalized logits (RNG handled outside the kernel).
        u = jax.random.uniform(key, self.logits.shape, minval=1e-6, maxval=1.0)
        g = -jnp.log(-jnp.log(u))
        return jnp.argmax(self.logits + g, axis=-1)[:, None]


def orthogonal_init(key, shape, gain):
    """Deterministic orthogonal init (rows x cols), PyTorch-style semantics."""
    rows, cols = shape
    flat_rows, flat_cols = (rows, cols) if rows >= cols else (cols, rows)
    a = jax.random.normal(key, (flat_rows, flat_cols), dtype=jnp.float32)
    q, r = jnp.linalg.qr(a)
    q = q * jnp.sign(jnp.diag(r))[None, :]
    if rows < cols:
        q = q.T
    return gain * q[:rows, :cols]


if __name__ == "__main__":
    key = jax.random.PRNGKey(0)
    k_x, k_w, k_s = jax.random.split(key, 3)

    B, num_inputs, num_outputs = 8, 32, 16

    x = jax.random.normal(k_x, (B, num_inputs), dtype=jnp.float32)
    weight = orthogonal_init(k_w, (num_outputs, num_inputs), gain=0.01)  # orthogonal_(gain=0.01)
    bias = jnp.zeros((num_outputs,), dtype=jnp.float32)                  # constant_(0)

    # Init-time param prep (transpose + bf16 cast hoisted out of the forward path).
    w_t, b2 = categorical_net_init(weight, bias)

    log_probs = categorical_net_forward(x, w_t, b2)            # f32 log-probs (default)
    jax.block_until_ready(log_probs)

    # Reference uses the same bf16-rounded operands with f32 accumulation (matches the
    # kernel's MXU input precision; drift vs. the pure-f32 torch model is ~bf16 epsilon).
    xr = x.astype(jnp.bfloat16).astype(jnp.float32)
    wr = w_t.astype(jnp.float32)
    ref_logits = xr @ wr + b2
    ref_logp = ref_logits - jax.scipy.special.logsumexp(ref_logits, axis=-1, keepdims=True)
    assert jnp.allclose(log_probs, ref_logp, atol=5e-3, rtol=5e-3)

    # Optional reduced-writeback path (bf16 log-probs) — fine for argmax / sampling use.
    log_probs_bf16 = categorical_net_forward(x, w_t, b2, out_dtype=jnp.bfloat16)
    jax.block_until_ready(log_probs_bf16)
    assert jnp.allclose(log_probs_bf16.astype(jnp.float32), ref_logp, atol=3e-2, rtol=3e-2)

    dist = CustomFixedCategoricalJax(log_probs)
    mode = dist.mode()
    lp = dist.log_probs(mode)
    p = dist.probs
    s = dist.sample(k_s)
    jax.block_until_ready((mode, lp, p, s))

    print("KERNEL_OK")
</pallas_src>

<mosaic_0001>
module attributes {stable_mosaic.version = 11 : i64} {
  func.func @_categorical_kernel(%arg0: i32, %arg1: memref<8x32xf32, #tpu.memory_space<vmem>>, %arg2: memref<32x16xbf16, #tpu.memory_space<vmem>>, %arg3: memref<1x16xf32, #tpu.memory_space<vmem>>, %arg4: memref<8x16xf32, #tpu.memory_space<vmem>>) attributes {dimension_semantics = [#tpu.dimension_semantics<parallel>], iteration_bounds = array<i64: 1>, scalar_prefetch = 0 : i64, scratch_operands = 0 : i64, tpu.core_type = #tpu.core_type<tc>, window_params = [{transform_indices = @transform_0, window_bounds = array<i64: 8, 32>}, {pipeline_mode = #tpu.pipeline_mode<synchronous>, transform_indices = @transform_1, window_bounds = array<i64: 32, 16>}, {pipeline_mode = #tpu.pipeline_mode<synchronous>, transform_indices = @transform_2, window_bounds = array<i64: 1, 16>}, {transform_indices = @transform_3, window_bounds = array<i64: 8, 16>}]} {
    %c0 = arith.constant 0 : index
    %c0_0 = arith.constant 0 : index
    %0 = vector.load %arg1[%c0, %c0_0] : memref<8x32xf32, #tpu.memory_space<vmem>>, vector<8x32xf32>
    %1 = arith.truncf %0 : vector<8x32xf32> to vector<8x32xbf16>
    %c0_1 = arith.constant 0 : index
    %c0_2 = arith.constant 0 : index
    %2 = vector.load %arg2[%c0_1, %c0_2] : memref<32x16xbf16, #tpu.memory_space<vmem>>, vector<32x16xbf16>
    %cst = arith.constant dense<0.000000e+00> : vector<8x16xf32>
    %3 = tpu.matmul %1, %2, %cst {dimension_numbers = #tpu.dot_dimension_numbers<[1], [0], [0], [1], [0, 0, 1, 1], [], []>} : vector<8x32xbf16>, vector<32x16xbf16>, vector<8x16xf32> -> vector<8x16xf32>
    %c0_3 = arith.constant 0 : index
    %c0_4 = arith.constant 0 : index
    %4 = vector.load %arg3[%c0_3, %c0_4] : memref<1x16xf32, #tpu.memory_space<vmem>>, vector<1x16xf32>
    %5 = vector.broadcast %4 : vector<1x16xf32> to vector<8x16xf32>
    %6 = arith.addf %3, %5 : vector<8x16xf32>
    %cst_5 = arith.constant dense<0xFF800000> : vector<8xf32>
    %7 = vector.multi_reduction <maximumf>, %6, %cst_5 [1] : vector<8x16xf32> to vector<8xf32>
    %8 = vector.shape_cast %7 : vector<8xf32> to vector<8x1xf32>
    %9 = vector.broadcast %8 : vector<8x1xf32> to vector<8x16xf32>
    %10 = arith.subf %6, %9 : vector<8x16xf32>
    %11 = math.exp %10 : vector<8x16xf32>
    %cst_6 = arith.constant dense<0.000000e+00> : vector<8xf32>
    %12 = vector.multi_reduction <add>, %11, %cst_6 [1] : vector<8x16xf32> to vector<8xf32>
    %13 = vector.shape_cast %12 : vector<8xf32> to vector<8x1xf32>
    %14 = math.log %13 : vector<8x1xf32>
    %15 = vector.broadcast %14 : vector<8x1xf32> to vector<8x16xf32>
    %16 = arith.subf %10, %15 : vector<8x16xf32>
    %c0_7 = arith.constant 0 : index
    %c0_8 = arith.constant 0 : index
    %17 = vector.load %arg4[%c0_7, %c0_8] : memref<8x16xf32, #tpu.memory_space<vmem>>, vector<8x16xf32>
    tpu.vector_store %arg4[%c0_7, %c0_8], %16 {strides = array<i32>} : memref<8x16xf32, #tpu.memory_space<vmem>>, vector<8x16xf32>,
    return
  }
  func.func @transform_0(%arg0: i32) -> (i32, i32) {
    %c0_i32 = arith.constant 0 : i32
    %c0_i32_0 = arith.constant 0 : i32
    return %arg0, %c0_i32 : i32, i32
  }
  func.func @transform_1(%arg0: i32) -> (i32, i32) {
    %c0_i32 = arith.constant 0 : i32
    %c0_i32_0 = arith.constant 0 : i32
    %c0_i32_1 = arith.constant 0 : i32
    return %c0_i32, %c0_i32_0 : i32, i32
  }
  func.func @transform_2(%arg0: i32) -> (i32, i32) {
    %c0_i32 = arith.constant 0 : i32
    %c0_i32_0 = arith.constant 0 : i32
    %c0_i32_1 = arith.constant 0 : i32
    return %c0_i32, %c0_i32_0 : i32, i32
  }
  func.func @transform_3(%arg0: i32) -> (i32, i32) {
    %c0_i32 = arith.constant 0 : i32
    %c0_i32_0 = arith.constant 0 : i32
    return %arg0, %c0_i32 : i32, i32
  }
}

</mosaic_0001>

<bundles_post_ra>
// kernel: tpu_custom_call.1
= control target key start
LH: loop header
LB: loop body
LE: loop exit
PB: predicated region body
PF: predicated region fallthrough
CT: control target
= control target key end

     0   :  { %v159_v1 = vmov 0.0   ;;  %vm160_vm0 = vmmov 0   ;;  %s200_s0 = inlined_call_operand.vmem [shape: f32[8,32], index: 0, kind: input, shape index: {}]   ;;  %s201_s1 = inlined_call_operand.vmem [shape: bf16[32,16], index: 1, kind: input, shape index: {}]   ;;  %s202_s2 = inlined_call_operand.vmem [shape: f32[1,16], index: 2, kind: input, shape index: {}]   ;;  %s203_s3 = inlined_call_operand.hbm [shape: f32[8,16], index: 3, kind: output, shape index: {}]  }
   0x1   :  { %v131_v0 = vld [vmem:[%s201_s1 + $0x8] sm:$0xff]   ;;  %120 = vmatprep.subr.bf16.mxu0 %v159_v1  ;;  %v132_v2 = vld [vmem:[%s201_s1] sm:$0xff]   ;;  %124 = vmatprep.mubr.msk.bf16.mxu0 %vm160_vm0, %v159_v1 }
   0x2   :  { %121 = vmatpush3.bf16.msra.mxu0 %v131_v0  ;;  %v16_v3 = vld [vmem:[%s200_s0] sm:$0xff] }
   0x3   :  { %8 = vsyncpa [#allocation3], 0  ;;  %122 = vmatprep.subr.bf16.mxu0 %v159_v1  ;;  %v17_v4 = vpack.c.bf16 %v16_v3, %v16_v3  ;;  %vm41_vm1 = vcmask 261120   ;;  %v113_v5 = vld [vmem:[%s202_s2] ss:$0 sm:$0xff]  ;;  %vm85_vm2 = vcmask 130048  }
   0x4   :  { %s161_s0 = smov [#allocation2]  }
   0x5   :  { %s105_s1 = sshll.u32 %s161_s0, 4  ;;  %s106_s1 = int_to_ptr.vmem [resolvable:$true] %s105_s1 }
   0x6   :  { %123 = vmatpush3.bf16.msra.mxu0 %v132_v2  ;;  %s137_s2 = scalar_lea.vmem %s106_s1, 128  ;;  %p142_p1 = scmp.lt.s32.totalorder %s106_s1, %s106_s1 }
   0x7   :  { %p138_p0 = scmp.ne.s32.totalorder %s106_s1, %s137_s2  ;;  %p143_p2 = scmp.lt.s32.totalorder %s137_s2, %s137_s2 }
   0x9   :  { %125 = vmatmul.mubr.msk.bf16.vlgmr.msra.gmra.mxu0 %vm41_vm1, %v17_v4  ;;  %p144_p3 = por %p143_p2, %p142_p1 }
   0xb   :  { %p145_p4 = pnand %p144_p3, %p138_p0 }
  0xc9   :  { %v79_v6 = vpop.f32.mrf.mxu0 }
  0xca   :  { %v80_v7 = vadd.f32 %v113_v5, %v79_v6 }
  0xcb   :  { %v126_v8 = vpop.f32.mrf.mxu0 }
  0xcc   :  { %v86_v9 = vsel %vm85_vm2, %v80_v7, -inf }
  0xcd   :  { %87 = vmax.xlane.f32.xlu0 %v86_v9  ;;  %v82_v10 = vpop.f32.mrf.mxu0 }
  0xcf   :  { %v127_v11 = vpop.f32.mrf.mxu0 }
 0x156   :  { %v88_v12 = vpop.xlane.xlu0 %87 }
 0x157   :  { %v89_v13 = vsub.f32 %v80_v7, %v88_v12 }
 0x159   :  { %v90_v14 = vmul.f32 1.442695, %v89_v13 }
 0x15b   :  { %133 = vpow2.f32 %v90_v14 }
 0x168   :  { %v134_v15 = vpop.eup %133 }
 0x169   :  { %v92_v16 = vsel %vm85_vm2, %v134_v15, 0.0 }
 0x16a   :  { %93 = vadd.xlane.f32.xlu0 %v92_v16 }
 0x1f3   :  { %v94_v17 = vpop.xlane.xlu0 %93 }
 0x1f4   :  { %135 = vlog2.f32 %v94_v17 }
 0x201   :  { %v136_v18 = vpop.eup %135 }
 0x202   :  { %v96_v19 = vmul.f32 0.6931472, %v136_v18 }
 0x204   :  { %v97_v20 = vsub.f32 %v89_v13, %v96_v19 }
 0x206   :  { %98 = vst.msk [vmem:[#allocation2] sm:$0xff] %vm85_vm2, %v97_v20 }
 0x207   :  { %148 = shalt.err (!%p145_p4)
}
 0x208   :  { %108 = dma.vmem_to_hbm [thread:$0]  %s106_s1, 128, %s203_s3, [#allocation3]  }
 0x209   :  { %157 = dma.done.wait [#allocation3], 128  }
 0x20a   :  { %158 = vsyncadd [#allocation3], 4294967168 }
 0x20b   :  { %112 = vsyncpa [#allocation3], 1 }

</bundles_post_ra>
